<compile_context>
chip_gen: v7x
topology: tpu7x:2x2x1
jax: 0.10.0
libtpu: 0.0.40
codegen_flags: <defaults>
</compile_context>

<pallas_src>
import jax
import jax.numpy as jnp
from jax.experimental import pallas as pl
from jax.experimental.pallas import tpu as pltpu

LN_EPS = 1e-12


def _bert_embeddings_kernel(tok_ids_smem, pos_ids_smem,        # scalar prefetch (SMEM)
                            type_ids_ref,                      # (TM, 1) int32, VMEM
                            tok_tab_hbm, pos_tab_hbm,          # (V,H)/(P,H) f32, HBM
                            type_tab_ref,                      # (T, H) f32, VMEM resident
                            gamma_ref, beta_ref,               # (1, H) f32, VMEM resident
                            out_ref,                           # (TM, H) f32, VMEM
                            tok_buf, pos_buf, sem):            # scratch
    tm, h = out_ref.shape
    base = pl.program_id(0) * tm

    # --- DMA row gather from HBM: token + position rows for this tile -------
    def _issue(r, carry):
        tid = tok_ids_smem[base + r]
        pid = pos_ids_smem[base + r]
        pltpu.make_async_copy(tok_tab_hbm.at[tid], tok_buf.at[r],
                              sem.at[0, r]).start()
        pltpu.make_async_copy(pos_tab_hbm.at[pid], pos_buf.at[r],
                              sem.at[1, r]).start()
        return carry

    jax.lax.fori_loop(0, tm, _issue, 0)

    def _wait(r, carry):
        pltpu.make_async_copy(tok_tab_hbm.at[0], tok_buf.at[r],
                              sem.at[0, r]).wait()
        pltpu.make_async_copy(pos_tab_hbm.at[0], pos_buf.at[r],
                              sem.at[1, r]).wait()
        return carry

    jax.lax.fori_loop(0, tm, _wait, 0)

    emb = tok_buf[...] + pos_buf[...]                        # (TM, H) f32

    # --- token-type embedding via VPU select (T is tiny, table resident) ----
    tt = type_ids_ref[...]                                   # (TM, 1) int32
    type_tab = type_tab_ref[...]                             # (T, H) f32
    typ = jnp.zeros_like(emb)
    for t in range(type_tab.shape[0]):                       # static, small
        row = jnp.broadcast_to(type_tab[t, :][None, :], emb.shape)
        typ = jnp.where(tt == t, row, typ)
    emb = emb + typ

    # --- fused LayerNorm statistics (one pass) + affine ----------------------
    inv_h = 1.0 / h
    s1 = jnp.sum(emb, axis=-1, keepdims=True)
    s2 = jnp.sum(emb * emb, axis=-1, keepdims=True)
    mean = s1 * inv_h
    var = s2 * inv_h - mean * mean
    inv_std = jax.lax.rsqrt(var + LN_EPS)
    out = (emb - mean) * inv_std * gamma_ref[...] + beta_ref[...]

    # TODO(synk): dropout omitted — nn.Dropout is identity in eval/inference.
    out_ref[...] = out.astype(out_ref.dtype)


def _pick_tile_rows(n_rows, cap=256):
    """Largest multiple-of-8 divisor of n_rows up to `cap`; else one full block."""
    if n_rows % 8 != 0:
        return n_rows
    best = 8
    t = 8
    while t <= min(cap, n_rows):
        if n_rows % t == 0:
            best = t
        t += 8
    return best


def bert_embeddings(input_ids, token_emb, pos_emb, type_emb, gamma, beta,
                    token_type_ids=None, position_ids=None, tile_rows=None):
    B, S = input_ids.shape
    V, H = token_emb.shape
    T = type_emb.shape[0]
    n_rows = B * S

    if token_type_ids is None:
        token_type_ids = jnp.zeros((B, S), dtype=jnp.int32)
    if position_ids is None:
        position_ids = jnp.broadcast_to(
            jnp.arange(S, dtype=jnp.int32)[None, :], (B, S))

    tm = tile_rows if tile_rows is not None else _pick_tile_rows(n_rows)
    assert n_rows % tm == 0, (n_rows, tm)
    num_tiles = n_rows // tm

    tok_ids_flat = input_ids.reshape(n_rows).astype(jnp.int32)
    pos_ids_flat = position_ids.reshape(n_rows).astype(jnp.int32)
    type_ids_col = token_type_ids.reshape(n_rows, 1).astype(jnp.int32)

    grid_spec = pltpu.PrefetchScalarGridSpec(
        num_scalar_prefetch=2,                 # flat token ids + flat position ids
        grid=(num_tiles,),
        in_specs=[
            pl.BlockSpec((tm, 1), lambda i, tok_ids, pos_ids: (i, 0)),  # type ids
            pl.BlockSpec(memory_space=pl.ANY),   # token table stays in HBM
            pl.BlockSpec(memory_space=pl.ANY),   # position table stays in HBM
            pl.BlockSpec((T, H), lambda i, tok_ids, pos_ids: (0, 0)),   # type table
            pl.BlockSpec((1, H), lambda i, tok_ids, pos_ids: (0, 0)),   # gamma
            pl.BlockSpec((1, H), lambda i, tok_ids, pos_ids: (0, 0)),   # beta
        ],
        out_specs=pl.BlockSpec((tm, H), lambda i, tok_ids, pos_ids: (i, 0)),
        scratch_shapes=[
            pltpu.VMEM((tm, H), jnp.float32),    # gathered token rows
            pltpu.VMEM((tm, H), jnp.float32),    # gathered position rows
            pltpu.SemaphoreType.DMA((2, tm)),
        ],
    )

    out_flat = pl.pallas_call(
        _bert_embeddings_kernel,
        out_shape=jax.ShapeDtypeStruct((n_rows, H), jnp.float32),
        grid_spec=grid_spec,
        compiler_params=pltpu.CompilerParams(
            dimension_semantics=("parallel",)),
    )(tok_ids_flat, pos_ids_flat,
      type_ids_col, token_emb, pos_emb, type_emb,
      gamma.reshape(1, H), beta.reshape(1, H))

    return out_flat.reshape(B, S, H)


def _reference(input_ids, token_emb, pos_emb, type_emb, gamma, beta,
               token_type_ids=None, position_ids=None):
    B, S = input_ids.shape
    if position_ids is None:
        position_ids = jnp.broadcast_to(jnp.arange(S)[None, :], (B, S))
    if token_type_ids is None:
        token_type_ids = jnp.zeros((B, S), dtype=jnp.int32)
    emb = (jnp.take(token_emb, input_ids, axis=0)
           + jnp.take(pos_emb, position_ids, axis=0)
           + jnp.take(type_emb, token_type_ids, axis=0))
    mean = emb.mean(-1, keepdims=True)
    var = ((emb - mean) ** 2).mean(-1, keepdims=True)
    return (emb - mean) / jnp.sqrt(var + LN_EPS) * gamma + beta


if __name__ == "__main__":
    # Small synthetic config (BertConfig analogue). H is a multiple of 128 so
    # the output tile is lane-dense.
    B, S = 2, 16           # batch, seq_len
    H = 128                # hidden_size
    V = 512                # vocab_size
    P = 32                 # max_position_embeddings
    T = 2                  # type_vocab_size

    key = jax.random.PRNGKey(0)
    k_tok, k_pos, k_typ, k_ids, k_tt, k_pid = jax.random.split(key, 6)

    # Deterministic parameter init (N(0, 0.02) like BERT); padding_idx=0 row zeroed.
    token_emb = 0.02 * jax.random.normal(k_tok, (V, H), dtype=jnp.float32)
    token_emb = token_emb.at[0].set(0.0)
    pos_emb = 0.02 * jax.random.normal(k_pos, (P, H), dtype=jnp.float32)
    type_emb = 0.02 * jax.random.normal(k_typ, (T, H), dtype=jnp.float32)
    gamma = jnp.ones((H,), dtype=jnp.float32)    # nn.LayerNorm default weight
    beta = jnp.zeros((H,), dtype=jnp.float32)    # nn.LayerNorm default bias

    input_ids = jax.random.randint(k_ids, (B, S), 0, V, dtype=jnp.int32)

    # Default token_type_ids / position_ids path (tile_rows=8 -> 4 grid tiles).
    out = bert_embeddings(input_ids, token_emb, pos_emb, type_emb, gamma, beta,
                          tile_rows=8)
    out = jax.block_until_ready(out)
    ref = _reference(input_ids, token_emb, pos_emb, type_emb, gamma, beta)
    assert out.shape == (B, S, H)
    assert jnp.allclose(out, ref, atol=1e-4, rtol=1e-4)

    # Explicit token_type_ids / position_ids path (exercises the type select
    # and the general position gather).
    token_type_ids = jax.random.randint(k_tt, (B, S), 0, T, dtype=jnp.int32)
    position_ids = jax.random.randint(k_pid, (B, S), 0, P, dtype=jnp.int32)
    out2 = bert_embeddings(input_ids, token_emb, pos_emb, type_emb, gamma, beta,
                           token_type_ids=token_type_ids,
                           position_ids=position_ids, tile_rows=16)
    out2 = jax.block_until_ready(out2)
    ref2 = _reference(input_ids, token_emb, pos_emb, type_emb, gamma, beta,
                      token_type_ids=token_type_ids, position_ids=position_ids)
    assert jnp.allclose(out2, ref2, atol=1e-4, rtol=1e-4)

    print("KERNEL_OK")
</pallas_src>

<mosaic_0001>
module attributes {stable_mosaic.version = 11 : i64} {
  func.func @_bert_embeddings_kernel(%arg0: i32, %arg1: memref<32xi32, #tpu.memory_space<smem>>, %arg2: memref<32xi32, #tpu.memory_space<smem>>, %arg3: memref<8x1xi32, #tpu.memory_space<vmem>>, %arg4: memref<512x128xf32, #tpu.memory_space<any>>, %arg5: memref<32x128xf32, #tpu.memory_space<any>>, %arg6: memref<2x128xf32, #tpu.memory_space<vmem>>, %arg7: memref<1x128xf32, #tpu.memory_space<vmem>>, %arg8: memref<1x128xf32, #tpu.memory_space<vmem>>, %arg9: memref<8x128xf32, #tpu.memory_space<vmem>>, %arg10: memref<8x128xf32, #tpu.memory_space<vmem>>, %arg11: memref<8x128xf32, #tpu.memory_space<vmem>>, %arg12: memref<2x8x!tpu.dma_semaphore, #tpu.memory_space<semaphore_mem>>) attributes {dimension_semantics = [#tpu.dimension_semantics<parallel>], iteration_bounds = array<i64: 4>, scalar_prefetch = 2 : i64, scratch_operands = 3 : i64, tpu.core_type = #tpu.core_type<tc>, window_params = [{transform_indices = @transform_0, window_bounds = array<i64: 8, 1>}, {}, {}, {pipeline_mode = #tpu.pipeline_mode<synchronous>, transform_indices = @transform_3, window_bounds = array<i64: 2, 128>}, {pipeline_mode = #tpu.pipeline_mode<synchronous>, transform_indices = @transform_4, window_bounds = array<i64: 1, 128>}, {pipeline_mode = #tpu.pipeline_mode<synchronous>, transform_indices = @transform_5, window_bounds = array<i64: 1, 128>}, {transform_indices = @transform_6, window_bounds = array<i64: 8, 128>}]} {
    %c8_i32 = arith.constant 8 : i32
    %0 = arith.muli %arg0, %c8_i32 : i32
    %c0_i32 = arith.constant 0 : i32
    %c8_i32_0 = arith.constant 8 : i32
    %1 = arith.addi %c0_i32, %c8_i32_0 : i32
    %c1_i32 = arith.constant 1 : i32
    scf.for %arg13 = %c0_i32 to %1 step %c1_i32  : i32 {
      %55 = arith.addi %0, %arg13 : i32
      %56 = arith.index_cast %55 : i32 to index
      %57 = memref.load %arg1[%56] : memref<32xi32, #tpu.memory_space<smem>>
      %58 = arith.addi %0, %arg13 : i32
      %59 = arith.index_cast %58 : i32 to index
      %60 = memref.load %arg2[%59] : memref<32xi32, #tpu.memory_space<smem>>
      %c0_i32_26 = arith.constant 0 : i32
      %c0_i32_27 = arith.constant 0 : i32
      %61 = tpu.memref_slice %arg4[%57, %c0_i32_27] : memref<512x128xf32, #tpu.memory_space<any>> -> memref<1x128xf32, #tpu.memory_space<any>>
      %62 = tpu.memref_squeeze %61 : memref<1x128xf32, #tpu.memory_space<any>> -> memref<128xf32, #tpu.memory_space<any>>
      %c0_i32_28 = arith.constant 0 : i32
      %63 = tpu.memref_slice %arg10[%arg13, %c0_i32_28] : memref<8x128xf32, #tpu.memory_space<vmem>> -> memref<1x128xf32, #tpu.memory_space<vmem>>
      %64 = tpu.memref_squeeze %63 : memref<1x128xf32, #tpu.memory_space<vmem>> -> memref<128xf32, #tpu.memory_space<vmem>>
      %65 = tpu.memref_slice %arg12[%c0_i32_26, %arg13] : memref<2x8x!tpu.dma_semaphore, #tpu.memory_space<semaphore_mem>> -> memref<1x1x!tpu.dma_semaphore, #tpu.memory_space<semaphore_mem>>
      %66 = tpu.memref_squeeze %65 : memref<1x1x!tpu.dma_semaphore, #tpu.memory_space<semaphore_mem>> -> memref<!tpu.dma_semaphore, #tpu.memory_space<semaphore_mem>>
      tpu.enqueue_dma source(%62 : memref<128xf32, #tpu.memory_space<any>>) target(%64 : memref<128xf32, #tpu.memory_space<vmem>>) target_semaphore(%66 : memref<!tpu.dma_semaphore, #tpu.memory_space<semaphore_mem>>)
      %c1_i32_29 = arith.constant 1 : i32
      %c0_i32_30 = arith.constant 0 : i32
      %67 = tpu.memref_slice %arg5[%60, %c0_i32_30] : memref<32x128xf32, #tpu.memory_space<any>> -> memref<1x128xf32, #tpu.memory_space<any>>
      %68 = tpu.memref_squeeze %67 : memref<1x128xf32, #tpu.memory_space<any>> -> memref<128xf32, #tpu.memory_space<any>>
      %c0_i32_31 = arith.constant 0 : i32
      %69 = tpu.memref_slice %arg11[%arg13, %c0_i32_31] : memref<8x128xf32, #tpu.memory_space<vmem>> -> memref<1x128xf32, #tpu.memory_space<vmem>>
      %70 = tpu.memref_squeeze %69 : memref<1x128xf32, #tpu.memory_space<vmem>> -> memref<128xf32, #tpu.memory_space<vmem>>
      %71 = tpu.memref_slice %arg12[%c1_i32_29, %arg13] : memref<2x8x!tpu.dma_semaphore, #tpu.memory_space<semaphore_mem>> -> memref<1x1x!tpu.dma_semaphore, #tpu.memory_space<semaphore_mem>>
      %72 = tpu.memref_squeeze %71 : memref<1x1x!tpu.dma_semaphore, #tpu.memory_space<semaphore_mem>> -> memref<!tpu.dma_semaphore, #tpu.memory_space<semaphore_mem>>
      tpu.enqueue_dma source(%68 : memref<128xf32, #tpu.memory_space<any>>) target(%70 : memref<128xf32, #tpu.memory_space<vmem>>) target_semaphore(%72 : memref<!tpu.dma_semaphore, #tpu.memory_space<semaphore_mem>>)
    }
    %c8_i32_1 = arith.constant 8 : i32
    %c0_i32_2 = arith.constant 0 : i32
    %c8_i32_3 = arith.constant 8 : i32
    %2 = arith.addi %c0_i32_2, %c8_i32_3 : i32
    %c1_i32_4 = arith.constant 1 : i32
    scf.for %arg13 = %c0_i32_2 to %2 step %c1_i32_4  : i32 {
      %c0_i32_26 = arith.constant 0 : i32
      %c0_i32_27 = arith.constant 0 : i32
      %c0_i32_28 = arith.constant 0 : i32
      %55 = tpu.memref_slice %arg4[%c0_i32_26, %c0_i32_28] : memref<512x128xf32, #tpu.memory_space<any>> -> memref<1x128xf32, #tpu.memory_space<any>>
      %56 = tpu.memref_squeeze %55 : memref<1x128xf32, #tpu.memory_space<any>> -> memref<128xf32, #tpu.memory_space<any>>
      %c0_i32_29 = arith.constant 0 : i32
      %57 = tpu.memref_slice %arg10[%arg13, %c0_i32_29] : memref<8x128xf32, #tpu.memory_space<vmem>> -> memref<1x128xf32, #tpu.memory_space<vmem>>
      %58 = tpu.memref_squeeze %57 : memref<1x128xf32, #tpu.memory_space<vmem>> -> memref<128xf32, #tpu.memory_space<vmem>>
      %59 = tpu.memref_slice %arg12[%c0_i32_27, %arg13] : memref<2x8x!tpu.dma_semaphore, #tpu.memory_space<semaphore_mem>> -> memref<1x1x!tpu.dma_semaphore, #tpu.memory_space<semaphore_mem>>
      %60 = tpu.memref_squeeze %59 : memref<1x1x!tpu.dma_semaphore, #tpu.memory_space<semaphore_mem>> -> memref<!tpu.dma_semaphore, #tpu.memory_space<semaphore_mem>>
      tpu.wait_dma2 semaphore(%60 : memref<!tpu.dma_semaphore, #tpu.memory_space<semaphore_mem>>) src(%56 : memref<128xf32, #tpu.memory_space<any>>) dst(%58 : memref<128xf32, #tpu.memory_space<vmem>>)
      %c0_i32_30 = arith.constant 0 : i32
      %c1_i32_31 = arith.constant 1 : i32
      %c0_i32_32 = arith.constant 0 : i32
      %61 = tpu.memref_slice %arg5[%c0_i32_30, %c0_i32_32] : memref<32x128xf32, #tpu.memory_space<any>> -> memref<1x128xf32, #tpu.memory_space<any>>
      %62 = tpu.memref_squeeze %61 : memref<1x128xf32, #tpu.memory_space<any>> -> memref<128xf32, #tpu.memory_space<any>>
      %c0_i32_33 = arith.constant 0 : i32
      %63 = tpu.memref_slice %arg11[%arg13, %c0_i32_33] : memref<8x128xf32, #tpu.memory_space<vmem>> -> memref<1x128xf32, #tpu.memory_space<vmem>>
      %64 = tpu.memref_squeeze %63 : memref<1x128xf32, #tpu.memory_space<vmem>> -> memref<128xf32, #tpu.memory_space<vmem>>
      %65 = tpu.memref_slice %arg12[%c1_i32_31, %arg13] : memref<2x8x!tpu.dma_semaphore, #tpu.memory_space<semaphore_mem>> -> memref<1x1x!tpu.dma_semaphore, #tpu.memory_space<semaphore_mem>>
      %66 = tpu.memref_squeeze %65 : memref<1x1x!tpu.dma_semaphore, #tpu.memory_space<semaphore_mem>> -> memref<!tpu.dma_semaphore, #tpu.memory_space<semaphore_mem>>
      tpu.wait_dma2 semaphore(%66 : memref<!tpu.dma_semaphore, #tpu.memory_space<semaphore_mem>>) src(%62 : memref<128xf32, #tpu.memory_space<any>>) dst(%64 : memref<128xf32, #tpu.memory_space<vmem>>)
    }
    %c8_i32_5 = arith.constant 8 : i32
    %c0 = arith.constant 0 : index
    %c0_6 = arith.constant 0 : index
    %3 = vector.load %arg10[%c0, %c0_6] : memref<8x128xf32, #tpu.memory_space<vmem>>, vector<8x128xf32>
    %c0_7 = arith.constant 0 : index
    %c0_8 = arith.constant 0 : index
    %4 = vector.load %arg11[%c0_7, %c0_8] : memref<8x128xf32, #tpu.memory_space<vmem>>, vector<8x128xf32>
    %5 = arith.addf %3, %4 : vector<8x128xf32>
    %c0_9 = arith.constant 0 : index
    %c0_10 = arith.constant 0 : index
    %6 = vector.load %arg3[%c0_9, %c0_10] : memref<8x1xi32, #tpu.memory_space<vmem>>, vector<8x1xi32>
    %c0_11 = arith.constant 0 : index
    %c0_12 = arith.constant 0 : index
    %7 = vector.load %arg6[%c0_11, %c0_12] : memref<2x128xf32, #tpu.memory_space<vmem>>, vector<2x128xf32>
    %cst = arith.constant 0.000000e+00 : f32
    %8 = vector.broadcast %cst : f32 to vector<8x128xf32>
    %9 = vector.extract_strided_slice %7 {offsets = [0, 0], sizes = [1, 128], strides = [1, 1]} : vector<2x128xf32> to vector<1x128xf32>
    %10 = vector.shape_cast %9 : vector<1x128xf32> to vector<128xf32>
    %11 = vector.shape_cast %10 : vector<128xf32> to vector<1x128xf32>
    %12 = vector.shape_cast %11 : vector<1x128xf32> to vector<1x128xf32>
    %13 = vector.broadcast %12 : vector<1x128xf32> to vector<8x128xf32>
    %c0_i32_13 = arith.constant 0 : i32
    %14 = vector.broadcast %c0_i32_13 : i32 to vector<8x1xi32>
    %15 = arith.cmpi eq, %6, %14 : vector<8x1xi32>
    %16 = vector.shape_cast %15 : vector<8x1xi1> to vector<8x1xi1>
    %17 = vector.broadcast %16 : vector<8x1xi1> to vector<8x128xi1>
    %18 = arith.select %17, %13, %8 : vector<8x128xi1>, vector<8x128xf32>
    %19 = vector.extract_strided_slice %7 {offsets = [1, 0], sizes = [1, 128], strides = [1, 1]} : vector<2x128xf32> to vector<1x128xf32>
    %20 = vector.shape_cast %19 : vector<1x128xf32> to vector<128xf32>
    %21 = vector.shape_cast %20 : vector<128xf32> to vector<1x128xf32>
    %22 = vector.shape_cast %21 : vector<1x128xf32> to vector<1x128xf32>
    %23 = vector.broadcast %22 : vector<1x128xf32> to vector<8x128xf32>
    %c1_i32_14 = arith.constant 1 : i32
    %24 = vector.broadcast %c1_i32_14 : i32 to vector<8x1xi32>
    %25 = arith.cmpi eq, %6, %24 : vector<8x1xi32>
    %26 = vector.shape_cast %25 : vector<8x1xi1> to vector<8x1xi1>
    %27 = vector.broadcast %26 : vector<8x1xi1> to vector<8x128xi1>
    %28 = arith.select %27, %23, %18 : vector<8x128xi1>, vector<8x128xf32>
    %29 = arith.addf %5, %28 : vector<8x128xf32>
    %cst_15 = arith.constant dense<0.000000e+00> : vector<8xf32>
    %30 = vector.multi_reduction <add>, %29, %cst_15 [1] : vector<8x128xf32> to vector<8xf32>
    %31 = vector.shape_cast %30 : vector<8xf32> to vector<8x1xf32>
    %32 = arith.mulf %29, %29 : vector<8x128xf32>
    %cst_16 = arith.constant dense<0.000000e+00> : vector<8xf32>
    %33 = vector.multi_reduction <add>, %32, %cst_16 [1] : vector<8x128xf32> to vector<8xf32>
    %34 = vector.shape_cast %33 : vector<8xf32> to vector<8x1xf32>
    %cst_17 = arith.constant 7.812500e-03 : f32
    %35 = vector.broadcast %cst_17 : f32 to vector<8x1xf32>
    %36 = arith.mulf %31, %35 : vector<8x1xf32>
    %cst_18 = arith.constant 7.812500e-03 : f32
    %37 = vector.broadcast %cst_18 : f32 to vector<8x1xf32>
    %38 = arith.mulf %34, %37 : vector<8x1xf32>
    %39 = arith.mulf %36, %36 : vector<8x1xf32>
    %40 = arith.subf %38, %39 : vector<8x1xf32>
    %cst_19 = arith.constant 9.99999996E-13 : f32
    %41 = vector.broadcast %cst_19 : f32 to vector<8x1xf32>
    %42 = arith.addf %40, %41 : vector<8x1xf32>
    %43 = math.rsqrt %42 : vector<8x1xf32>
    %44 = vector.broadcast %36 : vector<8x1xf32> to vector<8x128xf32>
    %45 = arith.subf %29, %44 : vector<8x128xf32>
    %46 = vector.broadcast %43 : vector<8x1xf32> to vector<8x128xf32>
    %47 = arith.mulf %45, %46 : vector<8x128xf32>
    %c0_20 = arith.constant 0 : index
    %c0_21 = arith.constant 0 : index
    %48 = vector.load %arg7[%c0_20, %c0_21] : memref<1x128xf32, #tpu.memory_space<vmem>>, vector<1x128xf32>
    %49 = vector.broadcast %48 : vector<1x128xf32> to vector<8x128xf32>
    %50 = arith.mulf %47, %49 : vector<8x128xf32>
    %c0_22 = arith.constant 0 : index
    %c0_23 = arith.constant 0 : index
    %51 = vector.load %arg8[%c0_22, %c0_23] : memref<1x128xf32, #tpu.memory_space<vmem>>, vector<1x128xf32>
    %52 = vector.broadcast %51 : vector<1x128xf32> to vector<8x128xf32>
    %53 = arith.addf %50, %52 : vector<8x128xf32>
    %c0_24 = arith.constant 0 : index
    %c0_25 = arith.constant 0 : index
    %54 = vector.load %arg9[%c0_24, %c0_25] : memref<8x128xf32, #tpu.memory_space<vmem>>, vector<8x128xf32>
    tpu.vector_store %arg9[%c0_24, %c0_25], %53 {strides = array<i32>} : memref<8x128xf32, #tpu.memory_space<vmem>>, vector<8x128xf32>,
    return
  }
  func.func @transform_0(%arg0: i32, %arg1: memref<32xi32, #tpu.memory_space<smem>>, %arg2: memref<32xi32, #tpu.memory_space<smem>>) -> (i32, i32) {
    %c0_i32 = arith.constant 0 : i32
    %c0_i32_0 = arith.constant 0 : i32
    return %arg0, %c0_i32 : i32, i32
  }
  func.func @transform_3(%arg0: i32, %arg1: memref<32xi32, #tpu.memory_space<smem>>, %arg2: memref<32xi32, #tpu.memory_space<smem>>) -> (i32, i32) {
    %c0_i32 = arith.constant 0 : i32
    %c0_i32_0 = arith.constant 0 : i32
    %c0_i32_1 = arith.constant 0 : i32
    return %c0_i32, %c0_i32_0 : i32, i32
  }
  func.func @transform_4(%arg0: i32, %arg1: memref<32xi32, #tpu.memory_space<smem>>, %arg2: memref<32xi32, #tpu.memory_space<smem>>) -> (i32, i32) {
    %c0_i32 = arith.constant 0 : i32
    %c0_i32_0 = arith.constant 0 : i32
    %c0_i32_1 = arith.constant 0 : i32
    return %c0_i32, %c0_i32_0 : i32, i32
  }
  func.func @transform_5(%arg0: i32, %arg1: memref<32xi32, #tpu.memory_space<smem>>, %arg2: memref<32xi32, #tpu.memory_space<smem>>) -> (i32, i32) {
    %c0_i32 = arith.constant 0 : i32
    %c0_i32_0 = arith.constant 0 : i32
    %c0_i32_1 = arith.constant 0 : i32
    return %c0_i32, %c0_i32_0 : i32, i32
  }
  func.func @transform_6(%arg0: i32, %arg1: memref<32xi32, #tpu.memory_space<smem>>, %arg2: memref<32xi32, #tpu.memory_space<smem>>) -> (i32, i32) {
    %c0_i32 = arith.constant 0 : i32
    %c0_i32_0 = arith.constant 0 : i32
    return %arg0, %c0_i32 : i32, i32
  }
}

</mosaic_0001>

<bundles_post_ra>
// kernel: tpu_custom_call.1
= control target key start
LH: loop header
LB: loop body
LE: loop exit
PB: predicated region body
PF: predicated region fallthrough
CT: control target
= control target key end

     0   :  { %s1004_s0 = inlined_call_operand.vmem [shape: s32[32], index: 0, kind: input, shape index: {}]   ;;  %s1005_s2 = inlined_call_operand.vmem [shape: s32[32,1], index: 2, kind: input, shape index: {}]   ;;  %s1006_s3 = inlined_call_operand.hbm [shape: f32[512,128], index: 3, kind: input, shape index: {}]   ;;  %s1007_s4 = inlined_call_operand.vmem [shape: f32[32,128], index: 4, kind: input, shape index: {}]   ;;  %s1008_s5 = inlined_call_operand.vmem [shape: f32[2,128], index: 5, kind: input, shape index: {}]   ;;  %s1009_s6 = inlined_call_operand.vmem [shape: f32[1,128], index: 6, kind: input, shape index: {}]   ;;  %s1010_s7 = inlined_call_operand.vmem [shape: f32[1,128], index: 7, kind: input, shape index: {}]   ;;  %s1011_s8 = inlined_call_operand.hbm [shape: f32[32,128], index: 8, kind: output, shape index: {}]   ;;  %s1012_s1 = inlined_call_operand.vmem [shape: s32[32], index: 1, kind: input, shape index: {}]  }
   0x1   :  { %1018 = sst [smem:[#allocation23_spill]] %s1005_s2  ;;  %s13_s29 = sshll.u32 %s1004_s0, 4  ;;  %s14_s29 = int_to_ptr.vmem [resolvable:$true] %s13_s29 }
   0x2   :  { %s17_s10 = sshll.u32 %s1012_s1, 4  ;;  %s657_s11 = scalar_lea.vmem %s14_s29, 16  ;;  %s18_s10 = int_to_ptr.vmem [resolvable:$true] %s17_s10 }
   0x3   :  { %p658_p0 = scmp.ne.s32.totalorder %s14_s29, %s657_s11  ;;  %p662_p1 = scmp.lt.s32.totalorder %s14_s29, %s14_s29 }
   0x4   :  { %p663_p2 = scmp.lt.s32.totalorder %s657_s11, %s657_s11 }
   0x6   :  { %p664_p3 = por %p663_p2, %p662_p1 }
   0x8   :  { %p665_p4 = pnand %p664_p3, %p658_p0 }
   0xa   :  { %668 = shalt.err (!%p665_p4)  }
   0xb   :  { %s791_s12 = smov [#allocation6]   ;;  %s669_s13 = scalar_lea.vmem %s18_s10, 16 }
   0xc   :  { %16 = dma.vmem_to_smem %s14_s29, 16, %s791_s12, [#allocation5] }
   0xd   :  { %p670_p5 = scmp.ne.s32.totalorder %s18_s10, %s669_s13  ;;  %p674_p6 = scmp.lt.s32.totalorder %s18_s10, %s18_s10 }
   0xe   :  { %p675_p7 = scmp.lt.s32.totalorder %s669_s13, %s669_s13 }
  0x10   :  { %p676_p8 = por %p675_p7, %p674_p6 }
  0x12   :  { %p677_p9 = pnand %p676_p8, %p670_p5 }
  0x14   :  { %680 = shalt.err (!%p677_p9)  }
  0x15   :  { %s792_s0 = smov [#allocation7]  }
  0x16   :  { %20 = dma.vmem_to_smem %s18_s10, 16, %s792_s0, [#allocation5] }
  0x17   :  { %757 = dma.done.wait [#allocation5], 32 }
  0x18   :  { %758 = vsyncadd [#allocation5], 4294967264 }
  0x19   :  { %22 = sfence }
  0x1a   :  { %23 = vsyncpa [#allocation9], 0 }
  0x1b   :  { %25 = vsyncpa [#allocation9 + $0x1], 0  ;;  %s847_s1 = smov 0   ;;  %s849_s14 = smov 0  }
  0x1c   :  { %s851_s15 = smov 0   ;;  %s853_s16 = smov 0  }
  0x1d LB: > { %1019 = sst [smem:[#allocation19_spill]] %s777_s15  ;;  %s868_s17 = sadd.s32 4294967295, %s781_s16   ;;  %s781_s16 = sphi %s853_s16, %s1031_s16   ;;  %s777_s15 = sphi %s851_s15, %s1033_s15   ;;  %s773_s14 = sphi %s849_s14, %s1035_s14   ;;  %s769_s1 = sphi %s847_s1, %s1034_s1  }
  0x1e   : > { %s566_s18 = sadd.s32 4294967294, %s781_s16   ;;  %s872_s19 = sadd.s32 1, %s781_s16  }
  0x1f   : > { %1020 = sst [smem:[#allocation20_spill]] %s872_s19  ;;  %s127_s20 = sadd.s32 1, %s777_s15 }
  0x20   : > { %s124_s21 = ssub.s32 %s781_s16, %s872_s19  ;;  %p137_p10 = scmp.ne.s32.totalorder %s777_s15, %s773_s14 }
  0x21   : > { %p125_p11 = scmp.eq.s32.totalorder %s124_s21, 0  ;;  %p138_p12 = scmp.eq.s32.totalorder %s868_s17, 3 }
  0x22   : > { %p143_p13 = scmp.ne.s32.totalorder %s773_s14, %s769_s1  ;;  %p144_p0 = scmp.eq.s32.totalorder %s566_s18, 3 }
  0x23   : > { %s883_s22 = scalar_select %p125_p11, %s777_s15, %s127_s20  }
  0x24   : > { %p885_p1 = por %p138_p12, %p137_p10  ;;  %p889_p2 = por %p144_p0, %p143_p13 }
  0x25   : > { %1021 = sst [smem:[#allocation21_spill]] %s883_s22  ;;  %p569_p3 = scmp.ge.s32.totalorder %s781_s16, 1 }
  0x26   : > { %s1023_s24 = scalar_select %p889_p2, 1, 0 }
  0x27   : > { %p178_p4 = scmp.lt.s32.totalorder %s781_s16, 5 }
  0x28   : > { %1024 = sst [smem:[#allocation22_spill]] %s1023_s24 }
  0x29   : > { %p179_p5 = pnand %p569_p3, %p178_p4 }
  0x2a   : > { %s1013_s25 = sand.u32 (!%p179_p5), 1, %s773_s14   ;;  %p203_p6 = scmp.lt.s32.totalorder (!%p179_p5), %s868_s17, 3 }
  0x2b   : > { %182 = sbr.rel (%p179_p5) target bundleno = 426 (0x1aa), region = 36  ;;  %s899_s26 = sshll.u32 (!%p179_p5), %s1013_s25, 3 }
  0x2c   : > { %s1025_s2 = sld [smem:[#allocation23_spill]] (!%p179_p5)  ;;  %s909_s12 = smov (!%p179_p5), 0  }
  0x32   : > { %s204_s28 = scalar_select %p203_p6, %s868_s17, 3 }
  0x34   : > { %s571_s29 = sshll.u32 %s204_s28, 3 }
  0x35   : > { %s906_s10 = scalar_lea.vmem %s1025_s2, %s571_s29 }
  0x36 LB: >> { %s1026_s27 = sshll.u32 %s868_s17, 3  ;;  %s220_s18 = scalar_lea.sflag [#allocation4], %s785_s12  ;;  %s785_s12 = sphi %s909_s12, %s213_s12  }
  0x37   : >> { %s214_s13 = sadd.s32 %s785_s12, %s1026_s27  ;;  %s920_s20 = scalar_lea.sflag %s220_s18, 8 [#allocation4] }
  0x38   : >> { %s215_s0 = sld [smem:[#allocation6 + %s214_s13]]  ;;  %s219_s21 = scalar_lea.vmem [#allocation2], %s785_s12 }
  0x39   : >> { %s228_s28 = sshll.u32 %s219_s21, 4  ;;  %s216_s29 = sld [smem:[#allocation7 + %s214_s13]]  ;;  %s229_s28 = int_to_ptr.vmem [resolvable:$true] %s228_s28 }
  0x3a   : >> { %s683_s27 = scalar_lea.hbm %s1006_s3, 8192 }
  0x3e   : >> { %s573_s30 = sshll.u32 %s215_s0, 4 }
  0x3f   : >> { %s218_s11 = scalar_lea.hbm %s1006_s3, %s573_s30 }
  0x40   : >> { %s681_s2 = scalar_lea.hbm %s218_s11, 16  ;;  %p684_p8 = scmp.lt.u32.totalorder %s218_s11, %s1006_s3 }
  0x41   : >> { %p682_p7 = scmp.ne.s32.totalorder %s218_s11, %s681_s2  ;;  %p685_p9 = scmp.lt.u32.totalorder %s683_s27, %s681_s2 }
  0x42   : >> { %p687_p11 = scmp.lt.u32.totalorder %s681_s2, %s218_s11 }
  0x43   : >> { %p686_p10 = por %p685_p9, %p684_p8 }
  0x45   : >> { %p688_p12 = por %p687_p11, %p686_p10 }
  0x47   : >> { %p689_p13 = pnand %p688_p12, %p682_p7 }
  0x49   : >> { %692 = shalt.err (!%p689_p13)  }
  0x4a   : >> { %s693_s13 = scalar_lea.vmem %s229_s28, 16  ;;  %s793_s25 = smov [#allocation2]  }
  0x4b   : >> { %p694_p0 = scmp.ne.s32.totalorder %s229_s28, %s693_s13  ;;  %s695_s0 = sshll.u32 %s793_s25, 4  ;;  %s696_s0 = int_to_ptr.vmem [resolvable:$false] %s695_s0 }
  0x4c   : >> { %s697_s21 = scalar_lea.vmem %s696_s0, 128  ;;  %p698_p3 = scmp.lt.s32.totalorder %s229_s28, %s696_s0 }
  0x4d   : >> { %p699_p4 = scmp.lt.s32.totalorder %s697_s21, %s693_s13 }
  0x4f   : >> { %p700_p5 = por %p699_p4, %p698_p3 }
  0x51   : >> { %p701_p6 = pnand %p700_p5, %p694_p0 }
  0x53   : >> { %704 = shalt.err (!%p701_p6)  }
  0x54   : >> { %231 = dma.hbm_to_vmem [thread:$0]  %s218_s11, 16, %s229_s28, %s220_s18 }
  0x55   : >> { %s232_s19 = scalar_lea.vmem %s1007_s4, %s216_s29  ;;  %s233_s22 = scalar_lea.vmem [#allocation3], %s785_s12 }
  0x56   : >> { %v253_v0 = vld [vmem:[%s232_s19] sm:$0x1] }
  0x57   : >> { %254 = vst [vmem:[%s233_s22] sm:$0x1] %v253_v0 }
  0x58   : >> { %279 = vsyncadd %s920_s20, 16  ;;  %s213_s12 = sadd.s32 1, %s785_s12  }
  0x59   : >> { %p210_p7 = scmp.ge.s32.totalorder %s213_s12, 8  }
  0x5a   : > { %s787_s24 = smov (%p210_p7), 0  }
  0x5b   : > { %212 = sbr.rel (!%p210_p7) target bundleno = 54 (0x36), region = 152 }
  0x62 LB: >> { %s286_s27 = scalar_lea.sflag [#allocation4], %s789_s24  ;;  %s789_s24 = sphi %s787_s24, %s285_s24  }
  0x63   : >> { %759 = dma.done.wait %s286_s27, 16 }
  0x64   : >> { %760 = vsyncadd %s286_s27, 4294967280  ;;  %s518_s11 = scalar_lea.sflag %s286_s27, 8 [#allocation4] }
  0x65   : >> { %761 = dma.done.wait %s518_s11, 16 }
  0x66   : >> { %762 = vsyncadd %s518_s11, 4294967280  ;;  %s285_s24 = sadd.s32 1, %s789_s24  }
  0x67   : >> { %p282_p8 = scmp.ge.s32.totalorder %s285_s24, 8  }
  0x68   : > { %v296_v1 = vld [vmem:[%s906_s10] sm:$0xff] (%p282_p8)  ;;  %v794_v2 = vmov (%p282_p8), 0   ;;  %v298_v5 = vlaneseq (%p282_p8)  ;;  %v294_v12 = vld [vmem:[#allocation3] sm:$0xff] (%p282_p8)  ;;  %s577_s30 = sshll.u32 (%p282_p8), %s868_s17, 7  ;;  %s1027_s9 = scalar_lea.vmem (%p282_p8), [#allocation8], %s899_s26 }
  0x69   : > { %284 = sbr.rel (!%p282_p8) target bundleno = 98 (0x62), region = 163  ;;  %654 = vset.pattern.permute.xlu0 (%p282_p8), %v794_v2  ;;  %vm302_vm0 = vcmp.eq.s32.totalorder (%p282_p8), %v296_v1, 0  ;;  %vm313_vm1 = vcmp.eq.s32.totalorder (%p282_p8), %v296_v1, 1  ;;  %v297_v8 = vld [vmem:[%s1008_s5] sm:$0x3] (%p282_p8)  ;;  %s365_s13 = sshll.u32 (%p282_p8), %s1027_s9, 4  ;;  %s960_s13 = int_to_ptr.vmem [resolvable:$true] %s365_s13 }
  0x6a   : > { %v303_v3 = vsel (%p282_p8), %vm302_vm0, 1, %v794_v2  ;;  %v314_v4 = vsel (%p282_p8), %vm313_vm1, 1, %v794_v2  ;;  %v299_v6 = vshrl.u32 (%p282_p8), %v298_v5, 7  ;;  %v293_v11 = vld [vmem:[#allocation2] sm:$0xff] (%p282_p8)  ;;  %s958_s21 = scalar_lea.hbm (%p282_p8), %s1011_s8, %s577_s30  ;;  %s1028_s2 = smov (%p282_p8), %s1027_s9 }
  0x6b   : > { %305 = vperm.xlu0 (%p282_p8), %654, %v303_v3   ;;  %v295_v15 = vadd.f32 (%p282_p8), %v294_v12, %v293_v11  ;;  %v574_v30 = vld [vmem:[%s1009_s6] ss:$0 sm:$0xff] (%p282_p8)  ;;  %s1029_s15 = sand.u32 (%p282_p8), 1, %s773_s14   ;;  %s705_s22 = scalar_lea.vmem (%p282_p8), %s960_s13, 128 }
  0x6c   : > { %v300_v7 = vsub.s32 (%p282_p8), 0, %v299_v6  ;;  %v311_v9 = vsub.s32 (%p282_p8), 1, %v299_v6  ;;  %v575_v32 = vld [vmem:[%s1010_s7] ss:$0 sm:$0xff] (%p282_p8)  ;;  %s352_s19 = scalar_lea.sflag (%p282_p8), [#allocation9], %s1029_s15  ;;  %p706_p9 = scmp.ne.s32.totalorder (%p282_p8), %s960_s13, %s705_s22 }
  0x6d   : > { %s795_s17 = smov (%p282_p8), [#allocation8]  }
  0x6e   : > { %v301_v13 = vrot.slane (%p282_p8), %v297_v8, %v300_v7  ;;  %v312_v14 = vrot.slane (%p282_p8), %v297_v8, %v311_v9  ;;  %p707_p10 = pnand (%p282_p8), %p706_p9, %p885_p1  ;;  %s709_s24 = sshll.u32 (%p282_p8), %s795_s17, 4  ;;  %s710_s24 = int_to_ptr.vmem [resolvable:$false] %s709_s24 }
  0x6f   : > { %316 = vperm.xlu0 (%p282_p8), %654, %v314_v4   ;;  %s711_s27 = scalar_lea.vmem (%p282_p8), %s710_s24, 256  ;;  %p712_p12 = scmp.lt.s32.totalorder (%p282_p8), %s960_s13, %s710_s24 }
  0x70   : > { %p708_p11 = pneg %p707_p10  ;;  %p713_p13 = scmp.lt.s32.totalorder %s711_s27, %s705_s22 }
  0x72   : > { %p714_p0 = por %p713_p13, %p712_p12 }
  0x74   : > { %p715_p3 = pnand %p714_p0, %p708_p11 }
  0xea   : > { %v306_v10 = vpop.permute.xlu0 %305 }
  0xeb   : > { %vm307_vm2 = vcmp.eq.s32.totalorder %v306_v10, 1 }
  0xec   : > { %v308_v17 = vsel %vm307_vm2, %v301_v13, 0.0 }
  0xee   : > { %v317_v16 = vpop.permute.xlu0 %316 }
  0xef   : > { %vm318_vm3 = vcmp.eq.s32.totalorder %v317_v16, 1 }
  0xf0   : > { %v319_v18 = vsel %vm318_vm3, %v312_v14, %v308_v17 }
  0xf1   : > { %v320_v19 = vadd.f32 %v319_v18, %v295_v15 }
  0xf3   : > { %321 = vadd.xlane.f32.xlu1 %v320_v19  ;;  %v323_v20 = vmul.f32 %v320_v19, %v320_v19 }
  0xf7   : > { %324 = vadd.xlane.f32.xlu1 %v323_v20 }
 0x180   : > { %v322_v21 = vpop.xlane.xlu1 %321 }
 0x181   : > { %v326_v22 = vmul.f32 0.0078125, %v322_v21 }
 0x183   : > { %v328_v24 = vmul.f32 %v326_v22, %v326_v22  ;;  %v332_v28 = vsub.f32 %v320_v19, %v326_v22 }
 0x184   : > { %v325_v23 = vpop.xlane.xlu1 %324 }
 0x185   : > { %v327_v25 = vmul.f32 0.0078125, %v325_v23 }
 0x187   : > { %v329_v26 = vsub.f32 %v327_v25, %v328_v24 }
 0x189   : > { %v330_v27 = vadd.f32 1e-12, %v329_v26 }
 0x18b   : > { %655 = vrsqrt.f32 %v330_v27 }
 0x195   : > { %v656_v29 = vpop.eup %655 }
 0x196   : > { %v333_v31 = vmul.f32 %v656_v29, %v332_v28 }
 0x198   : > { %v341_v33 = vmul.f32 %v574_v30, %v333_v31 }
 0x19a   : > { %v349_v34 = vadd.f32 %v575_v32, %v341_v33 }
 0x19c   : > { %350 = vst [vmem:[%s1028_s2] sm:$0xff] %v349_v34 }
 0x19d   : > { %718 = shalt.err (!%p715_p3)
}
 0x19e   : > { %s719_s26 = scalar_lea.hbm %s958_s21, 128  ;;  %s723_s18 = scalar_lea.hbm %s1011_s8, 512 }
 0x19f   : > { %p720_p4 = scmp.ne.s32.totalorder %s958_s21, %s719_s26  ;;  %p724_p7 = scmp.lt.u32.totalorder %s958_s21, %s1011_s8 }
 0x1a0   : > { %p725_p8 = scmp.lt.u32.totalorder %s723_s18, %s719_s26  ;;  %p727_p10 = scmp.lt.u32.totalorder %s719_s26, %s958_s21 }
 0x1a1   : > { %p721_p5 = pnand %p720_p4, %p885_p1 }
 0x1a2   : > { %p726_p9 = por %p725_p8, %p724_p7 }
 0x1a3   : > { %p722_p6 = pneg %p721_p5 }
 0x1a4   : > { %p728_p11 = por %p727_p10, %p726_p9 }
 0x1a6   : > { %p729_p12 = pnand %p728_p11, %p722_p6 }
 0x1a8   : > { %732 = shalt.err (!%p729_p12)
}
 0x1a9   : > { %596 = dma.vmem_to_hbm [thread:$0]  (%p885_p1), %s960_s13, 128, %s958_s21, %s352_s19  }
 0x1aa PF: > { %p602_p13 = scmp.ge.s32.totalorder %s781_s16, 2  ;;  %s377_s29 = sand.u32 1, %s769_s1  }
 0x1ab   : > { %s378_s30 = scalar_lea.sflag [#allocation9], %s377_s29 }
 0x1ac   : > { %p599_p0 = pnand %p602_p13, %p889_p2 }
 0x1ae   : > { %764 = dma.done.wait (!%p599_p0), %s378_s30, 128  }
 0x1af   : > { %766 = vsyncadd (!%p599_p0), %s378_s30, 4294967168  ;;  %s1031_s16 = sld [smem:[#allocation20_spill]]  ;;  %s1032_s9 = sld [smem:[#allocation19_spill]] }
 0x1b0   : > { %s1033_s15 = sld [smem:[#allocation21_spill]]  ;;  %s1034_s1 = smov %s773_s14 }
 0x1b5   : > { %p28_p3 = scmp.ge.s32.totalorder %s1031_s16, 6   ;;  %s1035_s14 = smov %s1032_s9 }
 0x1b7   :  { %30 = sbr.rel (!%p28_p3) target bundleno = 29 (0x1d), region = 174 }
 0x1be   :  { %383 = vsyncpa [#allocation9], 1 }
 0x1bf   :  { %385 = vsyncpa [#allocation9 + $0x1], 1 }
 0x1c0   :  { %386 = vsyncmov [#allocation4] }
 0x1c3   :  { %s387_s23 = vpop.sfrf %386 }
 0x1c4   :  { %p580_p1 = scmp.ne.s32.totalorder %s387_s23, 0 }
 0x1c6   :  { %391 = shalt.err (%p580_p1)  }
 0x1c7   :  { %393 = vsyncmov [#allocation4 + $0x1] }
 0x1ca   :  { %s394_s13 = vpop.sfrf %393 }
 0x1cb   :  { %p581_p2 = scmp.ne.s32.totalorder %s394_s13, 0 }
 0x1cd   :  { %398 = shalt.err (%p581_p2)  }
 0x1ce   :  { %400 = vsyncmov [#allocation4 + $0x2] }
 0x1d1   :  { %s401_s25 = vpop.sfrf %400 }
 0x1d2   :  { %p582_p4 = scmp.ne.s32.totalorder %s401_s25, 0 }
 0x1d4   :  { %405 = shalt.err (%p582_p4)  }
 0x1d5   :  { %407 = vsyncmov [#allocation4 + $0x3] }
 0x1d8   :  { %s408_s0 = vpop.sfrf %407 }
 0x1d9   :  { %p583_p5 = scmp.ne.s32.totalorder %s408_s0, 0 }
 0x1db   :  { %412 = shalt.err (%p583_p5)  }
 0x1dc   :  { %414 = vsyncmov [#allocation4 + $0x4] }
 0x1df   :  { %s415_s16 = vpop.sfrf %414 }
 0x1e0   :  { %p584_p6 = scmp.ne.s32.totalorder %s415_s16, 0 }
 0x1e2   :  { %419 = shalt.err (%p584_p6)  }
 0x1e3   :  { %421 = vsyncmov [#allocation4 + $0x5] }
 0x1e6   :  { %s422_s3 = vpop.sfrf %421 }
 0x1e7   :  { %p585_p7 = scmp.ne.s32.totalorder %s422_s3, 0 }
 0x1e9   :  { %426 = shalt.err (%p585_p7)  }
 0x1ea   :  { %428 = vsyncmov [#allocation4 + $0x6] }
 0x1ed   :  { %s429_s4 = vpop.sfrf %428 }
 0x1ee   :  { %p586_p8 = scmp.ne.s32.totalorder %s429_s4, 0 }
 0x1f0   :  { %433 = shalt.err (%p586_p8)  }
 0x1f1   :  { %435 = vsyncmov [#allocation4 + $0x7] }
 0x1f4   :  { %s436_s5 = vpop.sfrf %435 }
 0x1f5   :  { %p587_p9 = scmp.ne.s32.totalorder %s436_s5, 0 }
 0x1f7   :  { %440 = shalt.err (%p587_p9)  }
 0x1f8   :  { %442 = vsyncmov [#allocation4 + $0x8] }
 0x1fb   :  { %s443_s6 = vpop.sfrf %442 }
 0x1fc   :  { %p588_p10 = scmp.ne.s32.totalorder %s443_s6, 0 }
 0x1fe   :  { %447 = shalt.err (%p588_p10)  }
 0x1ff   :  { %449 = vsyncmov [#allocation4 + $0x9] }
 0x202   :  { %s450_s7 = vpop.sfrf %449 }
 0x203   :  { %p589_p11 = scmp.ne.s32.totalorder %s450_s7, 0 }
 0x205   :  { %454 = shalt.err (%p589_p11)  }
 0x206   :  { %456 = vsyncmov [#allocation4 + $0xa] }
 0x209   :  { %s457_s8 = vpop.sfrf %456 }
 0x20a   :  { %p590_p12 = scmp.ne.s32.totalorder %s457_s8, 0 }
 0x20c   :  { %461 = shalt.err (%p590_p12)  }
 0x20d   :  { %463 = vsyncmov [#allocation4 + $0xb] }
 0x210   :  { %s464_s1 = vpop.sfrf %463 }
 0x211   :  { %p591_p13 = scmp.ne.s32.totalorder %s464_s1, 0 }
 0x213   :  { %468 = shalt.err (%p591_p13)  }
 0x214   :  { %470 = vsyncmov [#allocation4 + $0xc] }
 0x217   :  { %s471_s14 = vpop.sfrf %470 }
 0x218   :  { %p592_p0 = scmp.ne.s32.totalorder %s471_s14, 0 }
 0x21a   :  { %475 = shalt.err (%p592_p0)  }
 0x21b   :  { %477 = vsyncmov [#allocation4 + $0xd] }
 0x21e   :  { %s478_s21 = vpop.sfrf %477 }
 0x21f   :  { %p593_p3 = scmp.ne.s32.totalorder %s478_s21, 0 }
 0x221   :  { %482 = shalt.err (%p593_p3)  }
 0x222   :  { %484 = vsyncmov [#allocation4 + $0xe] }
 0x225   :  { %s485_s2 = vpop.sfrf %484 }
 0x226   :  { %p594_p1 = scmp.ne.s32.totalorder %s485_s2, 0 }
 0x228   :  { %489 = shalt.err (%p594_p1)  }
 0x229   :  { %491 = vsyncmov [#allocation4 + $0xf] }
 0x22c   :  { %s492_s15 = vpop.sfrf %491 }
 0x22d   :  { %p595_p2 = scmp.ne.s32.totalorder %s492_s15, 0 }
 0x22f   :  { %496 = shalt.err (%p595_p2)  }

</bundles_post_ra>
